<compile_context>
chip_gen: v6e
topology: v6e:2x2x1
jax: 0.10.0
libtpu: 0.0.40
codegen_flags: <defaults>
</compile_context>

<pallas_src>
import jax
import jax.numpy as jnp
from jax.experimental import pallas as pl
from jax.experimental.pallas import tpu as pltpu

N, H, W = 2, 8, 8
NHW = N * H * W                  # 128 -> exactly one vreg lane width
PLANES = 4
P_PAD = 8                        # planes padded to a full sublane tile
EXP = 4                          # Bottleneck.expansion
INPLANES = PLANES * EXP          # 16 (identity add shape-valid, downsample=None)
OUTC = PLANES * EXP              # 16
EPS = 1e-5

# The lane-roll im2col hard-assumes the whole (N,H,W) volume packs the lane
# axis exactly; generalize before reusing with other shapes.
assert NHW == 128, "kernel assumes N*H*W == 128 (one vreg lane width)"


def _bn(h, gamma, beta, relu=True):
    # Training-mode BatchNorm2d on a (C, NHW) slab: one-pass statistics and a
    # single fused scale/shift. gamma/beta are (C, 1) columns; zero-padded
    # channel rows (gamma=beta=0) stay identically zero.
    inv_n = 1.0 / h.shape[1]
    mean = jnp.sum(h, axis=1, keepdims=True) * inv_n
    var = jnp.sum(h * h, axis=1, keepdims=True) * inv_n - mean * mean
    scale = gamma * jax.lax.rsqrt(var + EPS)
    shift = beta - mean * scale
    out = h * scale + shift
    if relu:
        out = jnp.maximum(out, 0.0)
    return out


def bottleneck_kernel(x_ref, w13_ref, w2_ref, bn_ref, mask_ref, o_ref):
    x = x_ref[...]                                             # (16, 128)

    # unpack the packed 1x1 weights and BN columns (static, tile-aligned slices)
    w13 = w13_ref[...]                                         # (24, 16)
    w1t = w13[0:P_PAD, :]                                      # (8, 16)
    w3t = w13[P_PAD:P_PAD + OUTC, 0:P_PAD]                     # (16, 8)
    bn = bn_ref[...]                                           # (64, 1)
    g1, b1 = bn[0:P_PAD], bn[P_PAD:2 * P_PAD]
    g2, b2 = bn[2 * P_PAD:3 * P_PAD], bn[3 * P_PAD:4 * P_PAD]
    g3, b3 = bn[4 * P_PAD:4 * P_PAD + OUTC], bn[4 * P_PAD + OUTC:]

    # conv1 (1x1) + bn1 + relu : (8,16) @ (16,128)
    h1 = jnp.dot(w1t, x, preferred_element_type=jnp.float32)
    h1 = _bn(h1, g1, b1)                                       # (8, 128)

    # conv2 (3x3, stride 1, pad 1): im2col from 9 lane-rolls (XLU), one
    # precomputed edge-mask multiply, one MXU matmul.
    # lane l = n*H*W + h*W + w; tap (kh,kw) reads source lane l + dh*W + dw.
    slabs = []
    for kh in range(3):
        for kw in range(3):
            d = (kh - 1) * W + (kw - 1)                        # lane offset of this tap
            if d == 0:
                slabs.append(h1)
            else:
                slabs.append(pltpu.roll(h1, (-d) % NHW, 1))    # [l] = h1[l + d]
    im2col = jnp.concatenate(slabs, axis=0) * mask_ref[...]    # (72, 128), masked edges
    h2 = jnp.dot(w2_ref[...], im2col, preferred_element_type=jnp.float32)
    h2 = _bn(h2, g2, b2)                                       # (8, 128)

    # conv3 (1x1) + bn3 (no relu yet): (16,8) @ (8,128)
    h3 = jnp.dot(w3t, h2, preferred_element_type=jnp.float32)
    h3 = _bn(h3, g3, b3, relu=False)                           # (16, 128)

    # residual add + relu; (16,128) = two unmasked (8,128) tile stores
    o_ref[...] = jnp.maximum(h3 + x, 0.0)


def init_params(key):
    k1, k2, k3, k4, k5 = jax.random.split(key, 5)
    w1 = 0.1 * jax.random.normal(k1, (INPLANES, PLANES), jnp.float32)      # 1x1: (Cin, P)
    w2 = 0.1 * jax.random.normal(k2, (3, 3, PLANES, PLANES), jnp.float32)  # 3x3: HWIO
    w3 = 0.1 * jax.random.normal(k3, (PLANES, OUTC), jnp.float32)          # 1x1: (P, Cout)
    gs = 1.0 + 0.1 * jax.random.normal(k4, (PLANES + PLANES + OUTC,), jnp.float32)
    bs = 0.1 * jax.random.normal(k5, (PLANES + PLANES + OUTC,), jnp.float32)
    g1, g2, g3 = gs[:PLANES], gs[PLANES:2 * PLANES], gs[2 * PLANES:]
    b1, b2, b3 = bs[:PLANES], bs[PLANES:2 * PLANES], bs[2 * PLANES:]
    return w1, g1, b1, w2, g2, b2, w3, g3, b3


def prepare_params(params):
    """One-time host/device prep: all weight reshapes, BN packing and the
    static conv2 edge masks are hoisted out of the forward path."""
    w1, g1, b1, w2, g2, b2, w3, g3, b3 = params
    pad_p = P_PAD - PLANES

    # pack both 1x1 weights into one (24,16) slab (sublane-aligned blocks):
    #   rows 0:8   -> conv1 weight as (P_PAD, Cin)
    #   rows 8:24  -> conv3 weight as (OUTC, P_PAD), lanes 8:16 zero
    w1t = jnp.pad(w1.T, ((0, pad_p), (0, 0)))                           # (8, 16)
    w3t = jnp.pad(w3.T, ((0, 0), (0, pad_p)))                           # (16, 8)
    w13 = jnp.zeros((P_PAD + OUTC, INPLANES), jnp.float32)
    w13 = w13.at[0:P_PAD, :].set(w1t)
    w13 = w13.at[P_PAD:, 0:P_PAD].set(w3t)

    # conv2 HWIO -> (Cout_pad, 9*Cin_pad), matching im2col row order (kh,kw,ci)
    w2p = jnp.pad(w2, ((0, 0), (0, 0), (0, pad_p), (0, pad_p)))         # (3,3,8,8)
    w2m = jnp.transpose(w2p, (3, 0, 1, 2)).reshape(P_PAD, 9 * P_PAD)    # (8, 72)

    # BN gamma/beta packed as one (64,1) column slab; each block 8-aligned.
    def col(v, c):
        return jnp.pad(v, (0, c - v.shape[0]))
    bn_col = jnp.concatenate([
        col(g1, P_PAD), col(b1, P_PAD),
        col(g2, P_PAD), col(b2, P_PAD),
        g3, b3,
    ]).reshape(-1, 1)                                                   # (64, 1)

    # conv2 zero-padding edge masks: static lane arithmetic, computed once.
    lane = jnp.arange(NHW)
    hh = (lane // W) % H
    ww = lane % W
    rows = []
    for kh in range(3):
        for kw in range(3):
            dh, dw = kh - 1, kw - 1
            valid = ((hh + dh >= 0) & (hh + dh < H) &
                     (ww + dw >= 0) & (ww + dw < W))
            rows.append(valid.astype(jnp.float32))
    mask = jnp.repeat(jnp.stack(rows), P_PAD, axis=0)                   # (72, 128)

    return w13, w2m, bn_col, mask


@jax.jit
def bottleneck_forward_slab(x_slab, packed):
    # Steady-state forward: slab (Cin, NHW) in -> slab (Cout, NHW) out.
    # Nothing here but the pallas_call; all prep lives in prepare_params.
    w13, w2m, bn_col, mask = packed
    vmem = pl.BlockSpec(memory_space=pltpu.MemorySpace.VMEM)
    return pl.pallas_call(
        bottleneck_kernel,
        out_shape=jax.ShapeDtypeStruct((OUTC, NHW), jnp.float32),
        in_specs=[vmem] * 5,
        out_specs=vmem,
    )(x_slab, w13, w2m, bn_col, mask)


# Boundary-only layout adapters (a fused ResNet stack would pass slabs through)
def nchw_to_slab(x_nchw):
    return jnp.transpose(x_nchw.astype(jnp.float32), (1, 0, 2, 3)).reshape(INPLANES, NHW)


def slab_to_nchw(s):
    return jnp.transpose(s.reshape(OUTC, N, H, W), (1, 0, 2, 3))


def reference(x_nchw, params):
    # pure-JAX reference with identical (training-mode BN) semantics
    w1, g1, b1, w2, g2, b2, w3, g3, b3 = params
    x = jnp.transpose(x_nchw.astype(jnp.float32), (0, 2, 3, 1))

    def bn(h, g, b, relu=True):
        m = jnp.mean(h, axis=(0, 1, 2), keepdims=True)
        v = jnp.mean((h - m) ** 2, axis=(0, 1, 2), keepdims=True)
        o = (h - m) / jnp.sqrt(v + EPS) * g.reshape(1, 1, 1, -1) + b.reshape(1, 1, 1, -1)
        return jnp.maximum(o, 0.0) if relu else o

    h = bn(jnp.einsum('nhwc,cp->nhwp', x, w1), g1, b1)
    h = jax.lax.conv_general_dilated(h, w2, (1, 1), 'SAME',
                                     dimension_numbers=('NHWC', 'HWIO', 'NHWC'))
    h = bn(h, g2, b2)
    h = bn(jnp.einsum('nhwc,cp->nhwp', h, w3), g3, b3, relu=False)
    out = jnp.maximum(h + x, 0.0)
    return jnp.transpose(out, (0, 3, 1, 2))


if __name__ == "__main__":
    key = jax.random.PRNGKey(0)
    kx, kp = jax.random.split(key)
    x = jax.random.normal(kx, (N, INPLANES, H, W), jnp.float32)   # NCHW like PyTorch
    params = init_params(kp)

    packed = prepare_params(params)           # one-time prep, hoisted out of forward
    x_slab = nchw_to_slab(x)                  # boundary-only layout conversion

    out_slab = jax.block_until_ready(bottleneck_forward_slab(x_slab, packed))
    out = slab_to_nchw(out_slab)
    ref = reference(x, params)

    assert out.shape == (N, OUTC, H, W)
    err = jnp.max(jnp.abs(out - ref))
    assert jnp.allclose(out, ref, atol=1e-3, rtol=1e-3), f"max abs diff {err}"
    print("KERNEL_OK")
</pallas_src>

<mosaic_0001>
module attributes {stable_mosaic.version = 11 : i64} {
  func.func @bottleneck_kernel(%arg0: memref<16x128xf32, #tpu.memory_space<vmem>>, %arg1: memref<24x16xf32, #tpu.memory_space<vmem>>, %arg2: memref<8x72xf32, #tpu.memory_space<vmem>>, %arg3: memref<64x1xf32, #tpu.memory_space<vmem>>, %arg4: memref<72x128xf32, #tpu.memory_space<vmem>>, %arg5: memref<16x128xf32, #tpu.memory_space<vmem>>) attributes {dimension_semantics = [], scalar_prefetch = 0 : i64, scratch_operands = 0 : i64, tpu.core_type = #tpu.core_type<tc>} {
    %c0 = arith.constant 0 : index
    %c0_0 = arith.constant 0 : index
    %0 = vector.load %arg0[%c0, %c0_0] : memref<16x128xf32, #tpu.memory_space<vmem>>, vector<16x128xf32>
    %c0_1 = arith.constant 0 : index
    %c0_2 = arith.constant 0 : index
    %1 = vector.load %arg1[%c0_1, %c0_2] : memref<24x16xf32, #tpu.memory_space<vmem>>, vector<24x16xf32>
    %2 = vector.extract_strided_slice %1 {offsets = [0, 0], sizes = [8, 16], strides = [1, 1]} : vector<24x16xf32> to vector<8x16xf32>
    %3 = vector.extract_strided_slice %1 {offsets = [8, 0], sizes = [16, 8], strides = [1, 1]} : vector<24x16xf32> to vector<16x8xf32>
    %c0_3 = arith.constant 0 : index
    %c0_4 = arith.constant 0 : index
    %4 = vector.load %arg3[%c0_3, %c0_4] : memref<64x1xf32, #tpu.memory_space<vmem>>, vector<64x1xf32>
    %5 = vector.extract_strided_slice %4 {offsets = [0, 0], sizes = [8, 1], strides = [1, 1]} : vector<64x1xf32> to vector<8x1xf32>
    %6 = vector.extract_strided_slice %4 {offsets = [8, 0], sizes = [8, 1], strides = [1, 1]} : vector<64x1xf32> to vector<8x1xf32>
    %7 = vector.extract_strided_slice %4 {offsets = [16, 0], sizes = [8, 1], strides = [1, 1]} : vector<64x1xf32> to vector<8x1xf32>
    %8 = vector.extract_strided_slice %4 {offsets = [24, 0], sizes = [8, 1], strides = [1, 1]} : vector<64x1xf32> to vector<8x1xf32>
    %9 = vector.extract_strided_slice %4 {offsets = [32, 0], sizes = [16, 1], strides = [1, 1]} : vector<64x1xf32> to vector<16x1xf32>
    %10 = vector.extract_strided_slice %4 {offsets = [48, 0], sizes = [16, 1], strides = [1, 1]} : vector<64x1xf32> to vector<16x1xf32>
    %cst = arith.constant dense<0.000000e+00> : vector<8x128xf32>
    %11 = tpu.matmul %2, %0, %cst {dimension_numbers = #tpu.dot_dimension_numbers<[1], [0], [0], [1], [0, 0, 1, 1], [], []>} : vector<8x16xf32>, vector<16x128xf32>, vector<8x128xf32> -> vector<8x128xf32>
    %cst_5 = arith.constant dense<0.000000e+00> : vector<8xf32>
    %12 = vector.multi_reduction <add>, %11, %cst_5 [1] : vector<8x128xf32> to vector<8xf32>
    %13 = vector.shape_cast %12 : vector<8xf32> to vector<8x1xf32>
    %cst_6 = arith.constant 7.812500e-03 : f32
    %14 = vector.broadcast %cst_6 : f32 to vector<8x1xf32>
    %15 = arith.mulf %13, %14 : vector<8x1xf32>
    %16 = arith.mulf %11, %11 : vector<8x128xf32>
    %cst_7 = arith.constant dense<0.000000e+00> : vector<8xf32>
    %17 = vector.multi_reduction <add>, %16, %cst_7 [1] : vector<8x128xf32> to vector<8xf32>
    %18 = vector.shape_cast %17 : vector<8xf32> to vector<8x1xf32>
    %cst_8 = arith.constant 7.812500e-03 : f32
    %19 = vector.broadcast %cst_8 : f32 to vector<8x1xf32>
    %20 = arith.mulf %18, %19 : vector<8x1xf32>
    %21 = arith.mulf %15, %15 : vector<8x1xf32>
    %22 = arith.subf %20, %21 : vector<8x1xf32>
    %cst_9 = arith.constant 9.99999974E-6 : f32
    %23 = vector.broadcast %cst_9 : f32 to vector<8x1xf32>
    %24 = arith.addf %22, %23 : vector<8x1xf32>
    %25 = math.rsqrt %24 : vector<8x1xf32>
    %26 = arith.mulf %5, %25 : vector<8x1xf32>
    %27 = arith.mulf %15, %26 : vector<8x1xf32>
    %28 = arith.subf %6, %27 : vector<8x1xf32>
    %29 = vector.broadcast %26 : vector<8x1xf32> to vector<8x128xf32>
    %30 = arith.mulf %11, %29 : vector<8x128xf32>
    %31 = vector.broadcast %28 : vector<8x1xf32> to vector<8x128xf32>
    %32 = arith.addf %30, %31 : vector<8x128xf32>
    %cst_10 = arith.constant 0.000000e+00 : f32
    %33 = vector.broadcast %cst_10 : f32 to vector<8x128xf32>
    %34 = arith.maximumf %32, %33 : vector<8x128xf32>
    %c9_i32 = arith.constant 9 : i32
    %35 = tpu.dynamic_rotate %34 by %c9_i32 dim 1 : vector<8x128xf32>, i32 -> vector<8x128xf32>
    %c8_i32 = arith.constant 8 : i32
    %36 = tpu.dynamic_rotate %34 by %c8_i32 dim 1 : vector<8x128xf32>, i32 -> vector<8x128xf32>
    %c7_i32 = arith.constant 7 : i32
    %37 = tpu.dynamic_rotate %34 by %c7_i32 dim 1 : vector<8x128xf32>, i32 -> vector<8x128xf32>
    %c1_i32 = arith.constant 1 : i32
    %38 = tpu.dynamic_rotate %34 by %c1_i32 dim 1 : vector<8x128xf32>, i32 -> vector<8x128xf32>
    %c127_i32 = arith.constant 127 : i32
    %39 = tpu.dynamic_rotate %34 by %c127_i32 dim 1 : vector<8x128xf32>, i32 -> vector<8x128xf32>
    %c121_i32 = arith.constant 121 : i32
    %40 = tpu.dynamic_rotate %34 by %c121_i32 dim 1 : vector<8x128xf32>, i32 -> vector<8x128xf32>
    %c120_i32 = arith.constant 120 : i32
    %41 = tpu.dynamic_rotate %34 by %c120_i32 dim 1 : vector<8x128xf32>, i32 -> vector<8x128xf32>
    %c119_i32 = arith.constant 119 : i32
    %42 = tpu.dynamic_rotate %34 by %c119_i32 dim 1 : vector<8x128xf32>, i32 -> vector<8x128xf32>
    %43 = tpu.concatenate %35, %36, %37, %38, %34, %39, %40, %41, %42 in 0 : vector<8x128xf32>, vector<8x128xf32>, vector<8x128xf32>, vector<8x128xf32>, vector<8x128xf32>, vector<8x128xf32>, vector<8x128xf32>, vector<8x128xf32>, vector<8x128xf32> -> vector<72x128xf32>
    %c0_11 = arith.constant 0 : index
    %c0_12 = arith.constant 0 : index
    %44 = vector.load %arg4[%c0_11, %c0_12] : memref<72x128xf32, #tpu.memory_space<vmem>>, vector<72x128xf32>
    %45 = arith.mulf %43, %44 : vector<72x128xf32>
    %c0_13 = arith.constant 0 : index
    %c0_14 = arith.constant 0 : index
    %46 = vector.load %arg2[%c0_13, %c0_14] : memref<8x72xf32, #tpu.memory_space<vmem>>, vector<8x72xf32>
    %cst_15 = arith.constant dense<0.000000e+00> : vector<8x128xf32>
    %47 = tpu.matmul %46, %45, %cst_15 {dimension_numbers = #tpu.dot_dimension_numbers<[1], [0], [0], [1], [0, 0, 1, 1], [], []>} : vector<8x72xf32>, vector<72x128xf32>, vector<8x128xf32> -> vector<8x128xf32>
    %cst_16 = arith.constant dense<0.000000e+00> : vector<8xf32>
    %48 = vector.multi_reduction <add>, %47, %cst_16 [1] : vector<8x128xf32> to vector<8xf32>
    %49 = vector.shape_cast %48 : vector<8xf32> to vector<8x1xf32>
    %cst_17 = arith.constant 7.812500e-03 : f32
    %50 = vector.broadcast %cst_17 : f32 to vector<8x1xf32>
    %51 = arith.mulf %49, %50 : vector<8x1xf32>
    %52 = arith.mulf %47, %47 : vector<8x128xf32>
    %cst_18 = arith.constant dense<0.000000e+00> : vector<8xf32>
    %53 = vector.multi_reduction <add>, %52, %cst_18 [1] : vector<8x128xf32> to vector<8xf32>
    %54 = vector.shape_cast %53 : vector<8xf32> to vector<8x1xf32>
    %cst_19 = arith.constant 7.812500e-03 : f32
    %55 = vector.broadcast %cst_19 : f32 to vector<8x1xf32>
    %56 = arith.mulf %54, %55 : vector<8x1xf32>
    %57 = arith.mulf %51, %51 : vector<8x1xf32>
    %58 = arith.subf %56, %57 : vector<8x1xf32>
    %cst_20 = arith.constant 9.99999974E-6 : f32
    %59 = vector.broadcast %cst_20 : f32 to vector<8x1xf32>
    %60 = arith.addf %58, %59 : vector<8x1xf32>
    %61 = math.rsqrt %60 : vector<8x1xf32>
    %62 = arith.mulf %7, %61 : vector<8x1xf32>
    %63 = arith.mulf %51, %62 : vector<8x1xf32>
    %64 = arith.subf %8, %63 : vector<8x1xf32>
    %65 = vector.broadcast %62 : vector<8x1xf32> to vector<8x128xf32>
    %66 = arith.mulf %47, %65 : vector<8x128xf32>
    %67 = vector.broadcast %64 : vector<8x1xf32> to vector<8x128xf32>
    %68 = arith.addf %66, %67 : vector<8x128xf32>
    %cst_21 = arith.constant 0.000000e+00 : f32
    %69 = vector.broadcast %cst_21 : f32 to vector<8x128xf32>
    %70 = arith.maximumf %68, %69 : vector<8x128xf32>
    %cst_22 = arith.constant dense<0.000000e+00> : vector<16x128xf32>
    %71 = tpu.matmul %3, %70, %cst_22 {dimension_numbers = #tpu.dot_dimension_numbers<[1], [0], [0], [1], [0, 0, 1, 1], [], []>} : vector<16x8xf32>, vector<8x128xf32>, vector<16x128xf32> -> vector<16x128xf32>
    %cst_23 = arith.constant dense<0.000000e+00> : vector<16xf32>
    %72 = vector.multi_reduction <add>, %71, %cst_23 [1] : vector<16x128xf32> to vector<16xf32>
    %73 = vector.shape_cast %72 : vector<16xf32> to vector<16x1xf32>
    %cst_24 = arith.constant 7.812500e-03 : f32
    %74 = vector.broadcast %cst_24 : f32 to vector<16x1xf32>
    %75 = arith.mulf %73, %74 : vector<16x1xf32>
    %76 = arith.mulf %71, %71 : vector<16x128xf32>
    %cst_25 = arith.constant dense<0.000000e+00> : vector<16xf32>
    %77 = vector.multi_reduction <add>, %76, %cst_25 [1] : vector<16x128xf32> to vector<16xf32>
    %78 = vector.shape_cast %77 : vector<16xf32> to vector<16x1xf32>
    %cst_26 = arith.constant 7.812500e-03 : f32
    %79 = vector.broadcast %cst_26 : f32 to vector<16x1xf32>
    %80 = arith.mulf %78, %79 : vector<16x1xf32>
    %81 = arith.mulf %75, %75 : vector<16x1xf32>
    %82 = arith.subf %80, %81 : vector<16x1xf32>
    %cst_27 = arith.constant 9.99999974E-6 : f32
    %83 = vector.broadcast %cst_27 : f32 to vector<16x1xf32>
    %84 = arith.addf %82, %83 : vector<16x1xf32>
    %85 = math.rsqrt %84 : vector<16x1xf32>
    %86 = arith.mulf %9, %85 : vector<16x1xf32>
    %87 = arith.mulf %75, %86 : vector<16x1xf32>
    %88 = arith.subf %10, %87 : vector<16x1xf32>
    %89 = vector.broadcast %86 : vector<16x1xf32> to vector<16x128xf32>
    %90 = arith.mulf %71, %89 : vector<16x128xf32>
    %91 = vector.broadcast %88 : vector<16x1xf32> to vector<16x128xf32>
    %92 = arith.addf %90, %91 : vector<16x128xf32>
    %93 = arith.addf %92, %0 : vector<16x128xf32>
    %cst_28 = arith.constant 0.000000e+00 : f32
    %94 = vector.broadcast %cst_28 : f32 to vector<16x128xf32>
    %95 = arith.maximumf %93, %94 : vector<16x128xf32>
    %c0_29 = arith.constant 0 : index
    %c0_30 = arith.constant 0 : index
    %96 = vector.load %arg5[%c0_29, %c0_30] : memref<16x128xf32, #tpu.memory_space<vmem>>, vector<16x128xf32>
    tpu.vector_store %arg5[%c0_29, %c0_30], %95 {strides = array<i32>} : memref<16x128xf32, #tpu.memory_space<vmem>>, vector<16x128xf32>,
    return
  }
}

</mosaic_0001>

<bundles_post_ra>
// kernel: bottleneck_forward_slab.1
= control target key start
LH: loop header
LB: loop body
LE: loop exit
PB: predicated region body
PF: predicated region fallthrough
CT: control target
= control target key end

     0   :  { %v525_v1 = vmov 0.0   ;;  %vm526_vm0 = vmmov 0   ;;  %s663_s0 = inlined_call_operand.vmem [shape: f32[16,128], index: 0, kind: input, shape index: {}]   ;;  %s664_s1 = inlined_call_operand.vmem [shape: f32[24,16], index: 1, kind: input, shape index: {}]   ;;  %s665_s2 = inlined_call_operand.vmem [shape: f32[8,72], index: 2, kind: input, shape index: {}]   ;;  %s666_s3 = inlined_call_operand.vmem [shape: f32[64,1], index: 3, kind: input, shape index: {}]   ;;  %s667_s4 = inlined_call_operand.vmem [shape: f32[72,128], index: 4, kind: input, shape index: {}]   ;;  %s668_s5 = inlined_call_operand.hbm [shape: f32[16,128], index: 5, kind: output, shape index: {}]  }
   0x1   :  { %v571_v0 = vld [vmem:[%s663_s0 + $0x8] sm:$0xff]  ;;  %447 = vmatprep.subr.mxu0 %v525_v1  ;;  %v577_v2 = vld [vmem:[%s663_s0] sm:$0xff]  ;;  %451 = vmatprep.mubr.msk.f32.mxu0 %vm526_vm0, %v525_v1 }
   0x2   :  { %10 = vsyncpa [#allocation3], 0  ;;  %448 = vmatpush3.msra.mxu0 %v571_v0  ;;  %v23_v3 = vld [vmem:[%s664_s1] sm:$0xff]  ;;  %vm34_vm1 = vcmask 130048   ;;  %454 = vmatprep.subr.mxu1 %v525_v1  ;;  %v527_v7 = vmov 0   ;;  %v27_v18 = vld [vmem:[%s666_s3 + $0x8] sm:$0xff] }
   0x3   :  { %449 = vmatprep.subr.mxu0 %v525_v1  ;;  %472 = vmatprep.mubr.msk.f32.mxu1 %vm526_vm0, %v525_v1  ;;  %v26_v15 = vld [vmem:[%s666_s3] sm:$0xff]  ;;  %s528_s27 = smov 120   ;;  %s529_s28 = smov 119   ;;  %v158_v27 = vld [vmem:[%s667_s4 + $0x38] sm:$0xff]  ;;  %v157_v31 = vld [vmem:[%s667_s4 + $0x30] sm:$0xff]  ;;  %vm170_vm2 = vcmask 588800  }
   0x4   :  { %450 = vmatpush3.msra.mxu0 %v577_v2  ;;  %493 = vset.pattern.permute.xlu1 %v527_v7  ;;  %s530_s29 = smov 121   ;;  %s531_s30 = smov 9   ;;  %v159_v26 = vld [vmem:[%s667_s4 + $0x40] sm:$0xff]  ;;  %v156_v35 = vld [vmem:[%s667_s4 + $0x28] sm:$0xff]  ;;  %v154_v39 = vld [vmem:[%s667_s4 + $0x18] sm:$0xff]  ;;  %vm271_vm3 = vcmask 64512  }
   0x5   :  { %452 = vmatmul.mubr.msk.f32.vlgmr.msra.gmra.mxu0 %vm34_vm1, %v23_v3  ;;  %494 = vset.pattern.permute.xlu0 %v527_v7  ;;  %s532_s6 = smov 127   ;;  %s533_s7 = smov 1   ;;  %v155_v37 = vld [vmem:[%s667_s4 + $0x20] sm:$0xff]  ;;  %v153_v43 = vld [vmem:[%s667_s4 + $0x10] sm:$0xff]  ;;  %v152_v46 = vld [vmem:[%s667_s4 + $0x8] sm:$0xff] }
   0x6   :  { %s534_s8 = smov 7   ;;  %s535_s9 = smov 8   ;;  %v151_v47 = vld [vmem:[%s667_s4] sm:$0xff]  ;;  %v28_v63 = vld [vmem:[%s666_s3 + $0x10] sm:$0xff]  ;;  %v24_v7 = vld [vmem:[%s664_s1 + $0x8] sm:$0xff] }
   0x7   :  { %v169_v52 = vld [vmem:[%s665_s2] sm:$0xff]  ;;  %477 = vmatprep.mubr.msk.f32.mxu0 %vm271_vm3, %v24_v7  ;;  %s536_s18 = smov [#allocation2]  }
   0x8   :  { %s416_s19 = sshll.u32 %s536_s18, 4  ;;  %s417_s19 = int_to_ptr.vmem [resolvable:$true] %s416_s19 }
   0x9   :  { %p508_p1 = scmp.lt.s32.totalorder %s417_s19, %s417_s19 }
  0xc5   :  { %v104_v4 = vpop.f32.mrf.mxu0 }
  0xc6   :  { %108 = vadd.xlane.f32.xlu0 %v104_v4  ;;  %v111_v6 = vmul.f32 %v104_v4, %v104_v4 }
  0xc7   :  { %v453_v5 = vpop.f32.mrf.mxu0 }
  0xca   :  { %112 = vadd.xlane.f32.xlu0 %v111_v6 }
 0x14f   :  { %v109_v8 = vpop.xlane.xlu0 %108 }
 0x150   :  { %v110_v9 = vmul.f32 0.0078125, %v109_v8 }
 0x152   :  { %v115_v11 = vmul.f32 %v110_v9, %v110_v9 }
 0x153   :  { %v113_v10 = vpop.xlane.xlu0 %112 }
 0x154   :  { %v114_v12 = vmul.f32 0.0078125, %v113_v10 }
 0x156   :  { %v116_v13 = vsub.f32 %v114_v12, %v115_v11 }
 0x158   :  { %v117_v14 = vadd.f32 1e-05, %v116_v13  ;;  %v25_v13 = vld [vmem:[%s664_s1 + $0x10] sm:$0xff] }
 0x15a   :  { %495 = vrsqrt.f32 %v117_v14 }
 0x167   :  { %v496_v16 = vpop.eup %495 }
 0x168   :  { %v119_v17 = vmul.f32 %v496_v16, %v26_v15 }
 0x16a   :  { %124 = vperm.xlu1 %493, %v119_v17   ;;  %v120_v19 = vmul.f32 %v119_v17, %v110_v9 }
 0x16c   :  { %v121_v20 = vsub.f32 %v27_v18, %v120_v19 }
 0x16e   :  { %130 = vperm.xlu1 %493, %v121_v20  }
 0x1e5   :  { %v125_v21 = vpop.permute.xlu1 %124 }
 0x1e6   :  { %v127_v22 = vmul.f32 %v125_v21, %v104_v4  ;;  %v29_v4 = vld [vmem:[%s666_s3 + $0x18] sm:$0xff] }
 0x1e9   :  { %v131_v23 = vpop.permute.xlu1 %130 }
 0x1ea   :  { %v133_v24 = vadd.f32 %v131_v23, %v127_v22 }
 0x1ec   :  { %v134_v25 = vmax.f32 %v133_v24, 0.0 }
 0x1ee   :  { %147 = vrot.lane.b32.xlu1 %v134_v25, %s528_s27  ;;  %149 = vrot.lane.b32.xlu0 %v134_v25, %s529_s28  ;;  %v164_v40 = vmul.f32 %v155_v37, %v134_v25 }
 0x1f2   :  { %145 = vrot.lane.b32.xlu1 %v134_v25, %s530_s29  ;;  %135 = vrot.lane.b32.xlu0 %v134_v25, %s531_s30 }
 0x1f6   :  { %143 = vrot.lane.b32.xlu1 %v134_v25, %s532_s6 }
 0x1fa   :  { %141 = vrot.lane.b32.xlu1 %v134_v25, %s533_s7 }
 0x1fe   :  { %139 = vrot.lane.b32.xlu1 %v134_v25, %s534_s8 }
 0x202   :  { %137 = vrot.lane.b32.xlu1 %v134_v25, %s535_s9 }
 0x260   :  { %v148_v28 = vpop.permute.xlu1 %147  ;;  %v150_v29 = vpop.permute.xlu0 %149 }
 0x261   :  { %v168_v30 = vmul.f32 %v159_v26, %v150_v29  ;;  %v167_v32 = vmul.f32 %v158_v27, %v148_v28 }
 0x263   :  { %455 = vmatpush3.msra.mxu1 %v168_v30 }
 0x264   :  { %v146_v33 = vpop.permute.xlu1 %145  ;;  %456 = vmatprep.subr.mxu1 %v525_v1  ;;  %v136_v48 = vpop.permute.xlu0 %135 }
 0x265   :  { %v166_v34 = vmul.f32 %v157_v31, %v146_v33  ;;  %457 = vmatpush3.msra.mxu1 %v167_v32  ;;  %v160_v51 = vmul.f32 %v151_v47, %v136_v48  ;;  %v30_v32 = vld [vmem:[%s666_s3 + $0x20] sm:$0xff] }
 0x266   :  { %458 = vmatprep.subr.mxu1 %v525_v1 }
 0x267   :  { %459 = vmatpush3.msra.mxu1 %v166_v34 }
 0x268   :  { %v144_v36 = vpop.permute.xlu1 %143  ;;  %460 = vmatprep.subr.mxu1 %v525_v1 }
 0x269   :  { %v165_v38 = vmul.f32 %v156_v35, %v144_v36  ;;  %v32_v35 = vld [vmem:[%s666_s3 + $0x30] sm:$0xff]  ;;  %v31_v36 = vld [vmem:[%s666_s3 + $0x28] sm:$0xff] }
 0x26b   :  { %461 = vmatpush3.msra.mxu1 %v165_v38 }
 0x26c   :  { %v142_v41 = vpop.permute.xlu1 %141  ;;  %462 = vmatprep.subr.mxu1 %v525_v1 }
 0x26d   :  { %v163_v42 = vmul.f32 %v154_v39, %v142_v41  ;;  %463 = vmatpush3.msra.mxu1 %v164_v40  ;;  %v33_v41 = vld [vmem:[%s666_s3 + $0x38] sm:$0xff]  ;;  %s503_s3 = scalar_lea.vmem %s417_s19, 256 }
 0x26e   :  { %464 = vmatprep.subr.mxu1 %v525_v1  ;;  %p504_p0 = scmp.ne.s32.totalorder %s417_s19, %s503_s3  ;;  %p509_p2 = scmp.lt.s32.totalorder %s503_s3, %s503_s3 }
 0x26f   :  { %465 = vmatpush3.msra.mxu1 %v163_v42 }
 0x270   :  { %v140_v44 = vpop.permute.xlu1 %139  ;;  %466 = vmatprep.subr.mxu1 %v525_v1  ;;  %p510_p3 = por %p509_p2, %p508_p1 }
 0x271   :  { %v162_v45 = vmul.f32 %v153_v43, %v140_v44 }
 0x272   :  { %p511_p4 = pnand %p510_p3, %p504_p0 }
 0x273   :  { %467 = vmatpush3.msra.mxu1 %v162_v45 }
 0x274   :  { %v138_v49 = vpop.permute.xlu1 %137  ;;  %468 = vmatprep.subr.mxu1 %v525_v1 }
 0x275   :  { %v161_v50 = vmul.f32 %v152_v46, %v138_v49 }
 0x277   :  { %469 = vmatpush3.msra.mxu1 %v161_v50 }
 0x278   :  { %470 = vmatprep.subr.mxu1 %v525_v1 }
 0x279   :  { %471 = vmatpush3.msra.mxu1 %v160_v51 }
 0x27a   :  { %473 = vmatmul.mubr.msk.f32.vlgmr.msra.gmra.mxu1 %vm170_vm2, %v169_v52 }
 0x33a   :  { %v240_v53 = vpop.f32.mrf.mxu1 }
 0x33b   :  { %244 = vadd.xlane.f32.xlu1 %v240_v53  ;;  %v247_v54 = vmul.f32 %v240_v53, %v240_v53 }
 0x33c   :  { %v474_v55 = vpop.f32.mrf.mxu1 }
 0x33d   :  { %248 = vadd.xlane.f32.xlu0 %v247_v54 }
 0x3c4   :  { %v245_v56 = vpop.xlane.xlu1 %244 }
 0x3c5   :  { %v246_v57 = vmul.f32 0.0078125, %v245_v56 }
 0x3c6   :  { %v249_v58 = vpop.xlane.xlu0 %248 }
 0x3c7   :  { %v251_v59 = vmul.f32 %v246_v57, %v246_v57  ;;  %v250_v60 = vmul.f32 0.0078125, %v249_v58 }
 0x3c9   :  { %v252_v61 = vsub.f32 %v250_v60, %v251_v59 }
 0x3cb   :  { %v253_v62 = vadd.f32 1e-05, %v252_v61 }
 0x3cd   :  { %497 = vrsqrt.f32 %v253_v62 }
 0x3da   :  { %v498_v1 = vpop.eup %497 }
 0x3db   :  { %v255_v3 = vmul.f32 %v498_v1, %v28_v63 }
 0x3dd   :  { %260 = vperm.xlu0 %494, %v255_v3   ;;  %v256_v5 = vmul.f32 %v255_v3, %v246_v57 }
 0x3df   :  { %v257_v6 = vsub.f32 %v29_v4, %v256_v5 }
 0x3e1   :  { %266 = vperm.xlu1 %493, %v257_v6  }
 0x458   :  { %v261_v8 = vpop.permute.xlu0 %260 }
 0x459   :  { %v263_v9 = vmul.f32 %v261_v8, %v240_v53 }
 0x45c   :  { %v267_v10 = vpop.permute.xlu1 %266 }
 0x45d   :  { %v269_v11 = vadd.f32 %v267_v10, %v263_v9 }
 0x45f   :  { %v270_v12 = vmax.f32 %v269_v11, 0.0 }
 0x461   :  { %475 = vmatprep.subr.mxu0 %v270_v12 }
 0x462   :  { %476 = vmatpush3.msra.mxu0 %v270_v12 }
 0x463   :  { %478 = vmatmul.mubr.msk.f32.vlgmr.msra.gmra.mxu0 %vm271_vm3, %v25_v13 }
 0x523   :  { %v479_v14 = vpop.f32.mrf.mxu0 }
 0x524   :  { %355 = vadd.xlane.f32.xlu0 %v479_v14  ;;  %v360_v17 = vmul.f32 %v479_v14, %v479_v14 }
 0x525   :  { %v344_v15 = vpop.f32.mrf.mxu0 }
 0x526   :  { %353 = vadd.xlane.f32.xlu1 %v344_v15  ;;  %v359_v16 = vmul.f32 %v344_v15, %v344_v15 }
 0x52a   :  { %361 = vadd.xlane.f32.xlu1 %v359_v16 }
 0x52e   :  { %363 = vadd.xlane.f32.xlu1 %v360_v17 }
 0x5ad   :  { %v356_v20 = vpop.xlane.xlu0 %355 }
 0x5ae   :  { %v358_v23 = vmul.f32 0.0078125, %v356_v20 }
 0x5af   :  { %v354_v18 = vpop.xlane.xlu1 %353 }
 0x5b0   :  { %v357_v19 = vmul.f32 0.0078125, %v354_v18  ;;  %v368_v27 = vmul.f32 %v358_v23, %v358_v23 }
 0x5b2   :  { %v367_v22 = vmul.f32 %v357_v19, %v357_v19 }
 0x5b3   :  { %v362_v21 = vpop.xlane.xlu1 %361 }
 0x5b4   :  { %v365_v24 = vmul.f32 0.0078125, %v362_v21 }
 0x5b6   :  { %v369_v25 = vsub.f32 %v365_v24, %v367_v22 }
 0x5b7   :  { %v364_v26 = vpop.xlane.xlu1 %363 }
 0x5b8   :  { %v371_v28 = vadd.f32 1e-05, %v369_v25  ;;  %v366_v29 = vmul.f32 0.0078125, %v364_v26 }
 0x5ba   :  { %499 = vrsqrt.f32 %v371_v28  ;;  %v370_v30 = vsub.f32 %v366_v29, %v368_v27 }
 0x5bc   :  { %v372_v31 = vadd.f32 1e-05, %v370_v30 }
 0x5be   :  { %501 = vrsqrt.f32 %v372_v31 }
 0x5c7   :  { %v500_v33 = vpop.eup %499 }
 0x5c8   :  { %v375_v34 = vmul.f32 %v500_v33, %v30_v32 }
 0x5ca   :  { %383 = vperm.xlu1 %493, %v375_v34   ;;  %v377_v37 = vmul.f32 %v375_v34, %v357_v19 }
 0x5cb   :  { %v502_v38 = vpop.eup %501 }
 0x5cc   :  { %v379_v39 = vsub.f32 %v32_v35, %v377_v37  ;;  %v376_v40 = vmul.f32 %v502_v38, %v31_v36 }
 0x5ce   :  { %395 = vperm.xlu1 %493, %v379_v39   ;;  %388 = vperm.xlu0 %494, %v376_v40   ;;  %v378_v42 = vmul.f32 %v376_v40, %v358_v23 }
 0x5d0   :  { %v380_v43 = vsub.f32 %v33_v41, %v378_v42 }
 0x5d2   :  { %400 = vperm.xlu1 %493, %v380_v43  }
 0x645   :  { %v384_v44 = vpop.permute.xlu1 %383 }
 0x646   :  { %v391_v45 = vmul.f32 %v384_v44, %v344_v15 }
 0x649   :  { %v389_v46 = vpop.permute.xlu0 %388  ;;  %v396_v47 = vpop.permute.xlu1 %395 }
 0x64a   :  { %v403_v48 = vadd.f32 %v396_v47, %v391_v45  ;;  %v392_v49 = vmul.f32 %v479_v14, %v389_v46 }
 0x64c   :  { %v405_v50 = vadd.f32 %v403_v48, %v577_v2 }
 0x64d   :  { %v401_v51 = vpop.permute.xlu1 %400 }
 0x64e   :  { %v407_v52 = vmax.f32 %v405_v50, 0.0  ;;  %v404_v53 = vadd.f32 %v401_v51, %v392_v49 }
 0x650   :  { %409 = vst [vmem:[#allocation2] sm:$0xff] %v407_v52  ;;  %v406_v54 = vadd.f32 %v404_v53, %v571_v0 }
 0x652   :  { %v408_v55 = vmax.f32 %v406_v54, 0.0 }
 0x654   :  { %410 = vst [vmem:[#allocation2 + $0x8] sm:$0xff] %v408_v55 }
 0x655   :  { %514 = shalt.err (!%p511_p4)
}
 0x656   :  { %s537_s20 = smov 128  }
 0x657   :  { %422 = dma.vmem_to_hbm [thread:$0]  %s417_s19, 256, %s668_s5, [#allocation3], %s537_s20, %s537_s20, %s535_s9  }
 0x658   :  { %523 = dma.done.wait [#allocation3], 256  }
 0x659   :  { %524 = vsyncadd [#allocation3], 4294967040 }
 0x65a   :  { %426 = vsyncpa [#allocation3], 1 }

</bundles_post_ra>
